<compile_context>
chip_gen: v7x
topology: tpu7x:2x2x1
jax: 0.10.0
libtpu: 0.0.40
codegen_flags: <defaults>
</compile_context>

<pallas_src>
import jax
import jax.numpy as jnp
from jax.experimental import pallas as pl
from jax.experimental.pallas import tpu as pltpu


IN_DIM, H1_DIM, H2_DIM, OUT_DIM = 6, 64, 256, 10


def _round_up(n, m):
    return ((n + m - 1) // m) * m


def _mlp_kernel(xT_ref, w1_ref, b1_ref, w2_ref, b2_ref, w3_ref, b3_ref, oT_ref):
    # All operands are VMEM tiles. Activations are (features, batch_tile):
    # batch on the lane axis -> dense loads/stores, features on sublanes.
    xT = xT_ref[...]                                                  # (6,  TB)

    # fc1 + ReLU :  (64,6) @ (6,TB) -> (64,TB)
    h1 = jnp.dot(w1_ref[...], xT, preferred_element_type=jnp.float32)
    h1 = jnp.maximum(h1 + b1_ref[...], 0.0)

    # fc2 + ReLU :  (256,64) @ (64,TB) -> (256,TB)
    h2 = jnp.dot(w2_ref[...], h1, preferred_element_type=jnp.float32)
    h2 = jnp.maximum(h2 + b2_ref[...], 0.0)

    # fc3 (logits) :  (10,256) @ (256,TB) -> (10,TB)
    out = jnp.dot(w3_ref[...], h2, preferred_element_type=jnp.float32)
    oT_ref[...] = (out + b3_ref[...]).astype(oT_ref.dtype)


def mlp_forward(x, params, *, tile_b=1024):
    """Fused 3-layer MLP. `x` is (batch, 6); returns (batch, 10)."""
    w1, b1, w2, b2, w3, b3 = params
    B = x.shape[0]

    # Lane tile: multiple of 128, capped by the (padded) batch size.
    tile_b = min(tile_b, _round_up(B, 128))
    Bp = _round_up(B, tile_b)
    n_tiles = Bp // tile_b

    # (features, batch) layout, zero-padded along batch to a tile multiple.
    xT = jnp.zeros((IN_DIM, Bp), x.dtype).at[:, :B].set(x.T)

    # Weights/biases: whole-array blocks, constant index_map -> VMEM-resident,
    # fetched once (not per grid step).
    def resident(a):
        return pl.BlockSpec(a.shape, lambda i: (0,) * a.ndim)

    oT = pl.pallas_call(
        _mlp_kernel,
        out_shape=jax.ShapeDtypeStruct((OUT_DIM, Bp), jnp.float32),
        grid=(n_tiles,),
        in_specs=[
            pl.BlockSpec((IN_DIM, tile_b), lambda i: (0, i)),   # x^T tile
            resident(w1), resident(b1),
            resident(w2), resident(b2),
            resident(w3), resident(b3),
        ],
        out_specs=pl.BlockSpec((OUT_DIM, tile_b), lambda i: (0, i)),
        compiler_params=pltpu.CompilerParams(
            dimension_semantics=("parallel",),
        ),
    )(xT, w1, b1, w2, b2, w3, b3)

    # Back to PyTorch's (batch, 10) layout; drop batch padding.
    return oT[:, :B].T


def init_params(key):
    """PyTorch nn.Linear default init (uniform in ±1/sqrt(fan_in)).
    Weights stored PyTorch-style as (out_features, in_features);
    biases as (out_features, 1) column vectors for the transposed dataflow."""
    dims = [(IN_DIM, H1_DIM), (H1_DIM, H2_DIM), (H2_DIM, OUT_DIM)]
    params = []
    for fan_in, fan_out in dims:
        key, kw, kb = jax.random.split(key, 3)
        bound = 1.0 / jnp.sqrt(jnp.float32(fan_in))
        w = jax.random.uniform(kw, (fan_out, fan_in), jnp.float32, -bound, bound)
        b = jax.random.uniform(kb, (fan_out, 1), jnp.float32, -bound, bound)
        params.extend([w, b])
    return tuple(params)


def reference_forward(x, params):
    w1, b1, w2, b2, w3, b3 = params
    h1 = jnp.maximum(x @ w1.T + b1.T, 0.0)
    h2 = jnp.maximum(h1 @ w2.T + b2.T, 0.0)
    return h2 @ w3.T + b3.T


if __name__ == "__main__":
    key = jax.random.PRNGKey(0)
    key, kx = jax.random.split(key)

    batch = 8
    state = jax.random.normal(kx, (batch, IN_DIM), jnp.float32)  # (B, 6)

    params = init_params(key)

    out = mlp_forward(state, params)
    out = jax.block_until_ready(out)

    ref = reference_forward(state, params)
    assert out.shape == (batch, OUT_DIM)
    assert jnp.allclose(out, ref, atol=1e-5, rtol=1e-5)

    print("KERNEL_OK")
</pallas_src>

<mosaic_0001>
module attributes {stable_mosaic.version = 11 : i64} {
  func.func @_mlp_kernel(%arg0: i32, %arg1: memref<6x128xf32, #tpu.memory_space<vmem>>, %arg2: memref<64x6xf32, #tpu.memory_space<vmem>>, %arg3: memref<64x1xf32, #tpu.memory_space<vmem>>, %arg4: memref<256x64xf32, #tpu.memory_space<vmem>>, %arg5: memref<256x1xf32, #tpu.memory_space<vmem>>, %arg6: memref<10x256xf32, #tpu.memory_space<vmem>>, %arg7: memref<10x1xf32, #tpu.memory_space<vmem>>, %arg8: memref<10x128xf32, #tpu.memory_space<vmem>>) attributes {dimension_semantics = [#tpu.dimension_semantics<parallel>], iteration_bounds = array<i64: 1>, scalar_prefetch = 0 : i64, scratch_operands = 0 : i64, tpu.core_type = #tpu.core_type<tc>, window_params = [{transform_indices = @transform_0, window_bounds = array<i64: 6, 128>}, {pipeline_mode = #tpu.pipeline_mode<synchronous>, transform_indices = @transform_1, window_bounds = array<i64: 64, 6>}, {pipeline_mode = #tpu.pipeline_mode<synchronous>, transform_indices = @transform_2, window_bounds = array<i64: 64, 1>}, {pipeline_mode = #tpu.pipeline_mode<synchronous>, transform_indices = @transform_3, window_bounds = array<i64: 256, 64>}, {pipeline_mode = #tpu.pipeline_mode<synchronous>, transform_indices = @transform_4, window_bounds = array<i64: 256, 1>}, {pipeline_mode = #tpu.pipeline_mode<synchronous>, transform_indices = @transform_5, window_bounds = array<i64: 10, 256>}, {pipeline_mode = #tpu.pipeline_mode<synchronous>, transform_indices = @transform_6, window_bounds = array<i64: 10, 1>}, {transform_indices = @transform_7, window_bounds = array<i64: 10, 128>}]} {
    %c0 = arith.constant 0 : index
    %c0_0 = arith.constant 0 : index
    %0 = vector.load %arg1[%c0, %c0_0] : memref<6x128xf32, #tpu.memory_space<vmem>>, vector<6x128xf32>
    %c0_1 = arith.constant 0 : index
    %c0_2 = arith.constant 0 : index
    %1 = vector.load %arg2[%c0_1, %c0_2] : memref<64x6xf32, #tpu.memory_space<vmem>>, vector<64x6xf32>
    %cst = arith.constant dense<0.000000e+00> : vector<64x128xf32>
    %2 = tpu.matmul %1, %0, %cst {dimension_numbers = #tpu.dot_dimension_numbers<[1], [0], [0], [1], [0, 0, 1, 1], [], []>} : vector<64x6xf32>, vector<6x128xf32>, vector<64x128xf32> -> vector<64x128xf32>
    %c0_3 = arith.constant 0 : index
    %c0_4 = arith.constant 0 : index
    %3 = vector.load %arg3[%c0_3, %c0_4] : memref<64x1xf32, #tpu.memory_space<vmem>>, vector<64x1xf32>
    %4 = vector.broadcast %3 : vector<64x1xf32> to vector<64x128xf32>
    %5 = arith.addf %2, %4 : vector<64x128xf32>
    %cst_5 = arith.constant 0.000000e+00 : f32
    %6 = vector.broadcast %cst_5 : f32 to vector<64x128xf32>
    %7 = arith.maximumf %5, %6 : vector<64x128xf32>
    %c0_6 = arith.constant 0 : index
    %c0_7 = arith.constant 0 : index
    %8 = vector.load %arg4[%c0_6, %c0_7] : memref<256x64xf32, #tpu.memory_space<vmem>>, vector<256x64xf32>
    %cst_8 = arith.constant dense<0.000000e+00> : vector<256x128xf32>
    %9 = tpu.matmul %8, %7, %cst_8 {dimension_numbers = #tpu.dot_dimension_numbers<[1], [0], [0], [1], [0, 0, 1, 1], [], []>} : vector<256x64xf32>, vector<64x128xf32>, vector<256x128xf32> -> vector<256x128xf32>
    %c0_9 = arith.constant 0 : index
    %c0_10 = arith.constant 0 : index
    %10 = vector.load %arg5[%c0_9, %c0_10] : memref<256x1xf32, #tpu.memory_space<vmem>>, vector<256x1xf32>
    %11 = vector.broadcast %10 : vector<256x1xf32> to vector<256x128xf32>
    %12 = arith.addf %9, %11 : vector<256x128xf32>
    %cst_11 = arith.constant 0.000000e+00 : f32
    %13 = vector.broadcast %cst_11 : f32 to vector<256x128xf32>
    %14 = arith.maximumf %12, %13 : vector<256x128xf32>
    %c0_12 = arith.constant 0 : index
    %c0_13 = arith.constant 0 : index
    %15 = vector.load %arg6[%c0_12, %c0_13] : memref<10x256xf32, #tpu.memory_space<vmem>>, vector<10x256xf32>
    %cst_14 = arith.constant dense<0.000000e+00> : vector<10x128xf32>
    %16 = tpu.matmul %15, %14, %cst_14 {dimension_numbers = #tpu.dot_dimension_numbers<[1], [0], [0], [1], [0, 0, 1, 1], [], []>} : vector<10x256xf32>, vector<256x128xf32>, vector<10x128xf32> -> vector<10x128xf32>
    %c0_15 = arith.constant 0 : index
    %c0_16 = arith.constant 0 : index
    %17 = vector.load %arg7[%c0_15, %c0_16] : memref<10x1xf32, #tpu.memory_space<vmem>>, vector<10x1xf32>
    %18 = vector.broadcast %17 : vector<10x1xf32> to vector<10x128xf32>
    %19 = arith.addf %16, %18 : vector<10x128xf32>
    %c0_17 = arith.constant 0 : index
    %c0_18 = arith.constant 0 : index
    %20 = vector.load %arg8[%c0_17, %c0_18] : memref<10x128xf32, #tpu.memory_space<vmem>>, vector<10x128xf32>
    tpu.vector_store %arg8[%c0_17, %c0_18], %19 {strides = array<i32>} : memref<10x128xf32, #tpu.memory_space<vmem>>, vector<10x128xf32>,
    return
  }
  func.func @transform_0(%arg0: i32) -> (i32, i32) {
    %c0_i32 = arith.constant 0 : i32
    %c0_i32_0 = arith.constant 0 : i32
    return %c0_i32, %arg0 : i32, i32
  }
  func.func @transform_1(%arg0: i32) -> (i32, i32) {
    %c0_i32 = arith.constant 0 : i32
    %c0_i32_0 = arith.constant 0 : i32
    %c0_i32_1 = arith.constant 0 : i32
    return %c0_i32, %c0_i32_0 : i32, i32
  }
  func.func @transform_2(%arg0: i32) -> (i32, i32) {
    %c0_i32 = arith.constant 0 : i32
    %c0_i32_0 = arith.constant 0 : i32
    %c0_i32_1 = arith.constant 0 : i32
    return %c0_i32, %c0_i32_0 : i32, i32
  }
  func.func @transform_3(%arg0: i32) -> (i32, i32) {
    %c0_i32 = arith.constant 0 : i32
    %c0_i32_0 = arith.constant 0 : i32
    %c0_i32_1 = arith.constant 0 : i32
    return %c0_i32, %c0_i32_0 : i32, i32
  }
  func.func @transform_4(%arg0: i32) -> (i32, i32) {
    %c0_i32 = arith.constant 0 : i32
    %c0_i32_0 = arith.constant 0 : i32
    %c0_i32_1 = arith.constant 0 : i32
    return %c0_i32, %c0_i32_0 : i32, i32
  }
  func.func @transform_5(%arg0: i32) -> (i32, i32) {
    %c0_i32 = arith.constant 0 : i32
    %c0_i32_0 = arith.constant 0 : i32
    %c0_i32_1 = arith.constant 0 : i32
    return %c0_i32, %c0_i32_0 : i32, i32
  }
  func.func @transform_6(%arg0: i32) -> (i32, i32) {
    %c0_i32 = arith.constant 0 : i32
    %c0_i32_0 = arith.constant 0 : i32
    %c0_i32_1 = arith.constant 0 : i32
    return %c0_i32, %c0_i32_0 : i32, i32
  }
  func.func @transform_7(%arg0: i32) -> (i32, i32) {
    %c0_i32 = arith.constant 0 : i32
    %c0_i32_0 = arith.constant 0 : i32
    return %c0_i32, %arg0 : i32, i32
  }
}

</mosaic_0001>

<bundles_post_ra>
// kernel: tpu_custom_call.1
= control target key start
LH: loop header
LB: loop body
LE: loop exit
PB: predicated region body
PF: predicated region fallthrough
CT: control target
= control target key end

     0   :  { %vm109_vm0 = vcmask 1045504   ;;  %vm84_vm1 = vcmask 48128   ;;  %v1197_v5 = vmov 0   ;;  %s1626_s0 = inlined_call_operand.vmem [shape: f32[6,128], index: 0, kind: input, shape index: {}]   ;;  %s1627_s1 = inlined_call_operand.vmem [shape: f32[64,6], index: 1, kind: input, shape index: {}]   ;;  %s1628_s2 = inlined_call_operand.vmem [shape: f32[64,1], index: 2, kind: input, shape index: {}]   ;;  %s1629_s3 = inlined_call_operand.vmem [shape: f32[256,64], index: 3, kind: input, shape index: {}]   ;;  %s1630_s4 = inlined_call_operand.vmem [shape: f32[256,1], index: 4, kind: input, shape index: {}]   ;;  %s1631_s5 = inlined_call_operand.vmem [shape: f32[10,256], index: 5, kind: input, shape index: {}]   ;;  %s1632_s6 = inlined_call_operand.vmem [shape: f32[10,1], index: 6, kind: input, shape index: {}]   ;;  %s1633_s7 = inlined_call_operand.hbm [shape: f32[10,128], index: 7, kind: output, shape index: {}]  }
   0x1   :  { %v27_v0 = vld [vmem:[%s1626_s0] sm:$0x3f]  ;;  %v29_v2 = vld [vmem:[%s1627_s1 + $0x8] sm:$0xff]  ;;  %v30_v4 = vld [vmem:[%s1627_s1 + $0x10] sm:$0xff]  ;;  %1171 = vset.pattern.permute.xlu0 %v1197_v5  ;;  %1172 = vset.pattern.permute.xlu1 %v1197_v5 }
   0x2   :  { %v28_v1 = vld [vmem:[%s1627_s1] sm:$0xff]  ;;  %1041 = vmatprep.subr.msk.mxu0 %vm109_vm0, %v27_v0  ;;  %v38_v6 = vld [vmem:[%s1628_s2 + $0x10] sm:$0xff]  ;;  %v31_v7 = vld [vmem:[%s1627_s1 + $0x18] sm:$0xff] }
   0x3   :  { %1043 = vmatprep.mubr.msk.f32.mxu0 %vm84_vm1, %v28_v1  ;;  %v36_v3 = vld [vmem:[%s1628_s2] sm:$0xff]  ;;  %1042 = vmatpush3.msk.msra.mxu0 %vm109_vm0, %v27_v0  ;;  %v37_v8 = vld [vmem:[%s1628_s2 + $0x8] sm:$0xff]  ;;  %v39_v10 = vld [vmem:[%s1628_s2 + $0x18] sm:$0xff] }
   0x4   :  { %1044 = vmatmul.mubr.msk.f32.vlgmr.msra.gmra.mrb[0].mxu0 %vm84_vm1, %v29_v2  ;;  %46 = vperm.xlu0 %1171, %v36_v3   ;;  %v32_v9 = vld [vmem:[%s1627_s1 + $0x20] sm:$0xff]  ;;  %v33_v11 = vld [vmem:[%s1627_s1 + $0x28] sm:$0xff]  ;;  %v34_v13 = vld [vmem:[%s1627_s1 + $0x30] sm:$0xff] }
   0x5   :  { %1046 = vmatprep.mubr.msk.f32.mxu0 %vm84_vm1, %v30_v4  ;;  %56 = vperm.xlu1 %1172, %v38_v6   ;;  %v40_v12 = vld [vmem:[%s1628_s2 + $0x20] sm:$0xff]  ;;  %v41_v14 = vld [vmem:[%s1628_s2 + $0x28] sm:$0xff]  ;;  %v35_v15 = vld [vmem:[%s1627_s1 + $0x38] sm:$0xff] }
   0x6   :  { %v42_v16 = vld [vmem:[%s1628_s2 + $0x30] sm:$0xff]  ;;  %v43_v17 = vld [vmem:[%s1628_s2 + $0x38] sm:$0xff]  ;;  %v274_v18 = vld [vmem:[%s1630_s4 + $0x80] sm:$0xff] }
   0x8   :  { %1047 = vmatmul.mubr.msk.f32.gmra.mrb[2].mxu0 %vm84_vm1, %v31_v7  ;;  %51 = vperm.xlu0 %1171, %v37_v8  }
   0x9   :  { %1049 = vmatprep.mubr.msk.f32.mxu0 %vm84_vm1, %v32_v9  ;;  %61 = vperm.xlu1 %1172, %v39_v10  }
   0xc   :  { %1050 = vmatmul.mubr.msk.f32.gmra.mrb[4].mxu0 %vm84_vm1, %v33_v11  ;;  %66 = vperm.xlu0 %1171, %v40_v12  }
   0xd   :  { %1052 = vmatprep.mubr.msk.f32.mxu0 %vm84_vm1, %v34_v13  ;;  %71 = vperm.xlu1 %1172, %v41_v14  }
  0x10   :  { %1053 = vmatmul.mubr.msk.f32.gmra.mrb[6].mxu0 %vm84_vm1, %v35_v15  ;;  %76 = vperm.xlu0 %1171, %v42_v16  }
  0x11   :  { %81 = vperm.xlu1 %1172, %v43_v17  }
  0x12   :  { %12 = vsyncpa [#allocation3], 0  ;;  %v275_v19 = vld [vmem:[%s1630_s4 + $0x88] sm:$0xff]  ;;  %v258_v20 = vld [vmem:[%s1630_s4] sm:$0xff]  ;;  %vm450_vm2 = vcmask 523264   ;;  %s1198_s1 = smov [#allocation2]  }
  0x13   :  { %v259_v21 = vld [vmem:[%s1630_s4 + $0x8] sm:$0xff]  ;;  %v276_v22 = vld [vmem:[%s1630_s4 + $0x90] sm:$0xff]  ;;  %v277_v23 = vld [vmem:[%s1630_s4 + $0x98] sm:$0xff]  ;;  %s902_s13 = sshll.u32 %s1198_s1, 4  ;;  %s903_s13 = int_to_ptr.vmem [resolvable:$true] %s902_s13 }
  0x14   :  { %372 = vperm.xlu0 %1171, %v274_v18   ;;  %v260_v24 = vld [vmem:[%s1630_s4 + $0x10] sm:$0xff]  ;;  %v261_v25 = vld [vmem:[%s1630_s4 + $0x18] sm:$0xff]  ;;  %v278_v26 = vld [vmem:[%s1630_s4 + $0xa0] sm:$0xff]  ;;  %s1173_s14 = scalar_lea.vmem %s903_s13, 256  ;;  %p1178_p1 = scmp.lt.s32.totalorder %s903_s13, %s903_s13 }
  0x15   :  { %377 = vperm.xlu1 %1172, %v275_v19   ;;  %v279_v27 = vld [vmem:[%s1630_s4 + $0xa8] sm:$0xff]  ;;  %v262_v28 = vld [vmem:[%s1630_s4 + $0x20] sm:$0xff]  ;;  %v280_v30 = vld [vmem:[%s1630_s4 + $0xb0] sm:$0xff]  ;;  %p1174_p0 = scmp.ne.s32.totalorder %s903_s13, %s1173_s14  ;;  %p1179_p2 = scmp.lt.s32.totalorder %s1173_s14, %s1173_s14 }
  0x16   :  { %v263_v29 = vld [vmem:[%s1630_s4 + $0x28] sm:$0xff]  ;;  %v281_v31 = vld [vmem:[%s1630_s4 + $0xb8] sm:$0xff]  ;;  %v264_v32 = vld [vmem:[%s1630_s4 + $0x30] sm:$0xff] }
  0x17   :  { %v265_v33 = vld [vmem:[%s1630_s4 + $0x38] sm:$0xff]  ;;  %v282_v34 = vld [vmem:[%s1630_s4 + $0xc0] sm:$0xff]  ;;  %v283_v35 = vld [vmem:[%s1630_s4 + $0xc8] sm:$0xff]  ;;  %p1180_p3 = por %p1179_p2, %p1178_p1 }
  0x18   :  { %292 = vperm.xlu0 %1171, %v258_v20   ;;  %v266_v36 = vld [vmem:[%s1630_s4 + $0x40] sm:$0xff]  ;;  %v267_v37 = vld [vmem:[%s1630_s4 + $0x48] sm:$0xff]  ;;  %v284_v38 = vld [vmem:[%s1630_s4 + $0xd0] sm:$0xff] }
  0x19   :  { %297 = vperm.xlu1 %1172, %v259_v21   ;;  %v285_v39 = vld [vmem:[%s1630_s4 + $0xd8] sm:$0xff]  ;;  %v268_v40 = vld [vmem:[%s1630_s4 + $0x50] sm:$0xff]  ;;  %v286_v42 = vld [vmem:[%s1630_s4 + $0xe0] sm:$0xff]  ;;  %p1181_p4 = pnand %p1180_p3, %p1174_p0 }
  0x1a   :  { %v269_v41 = vld [vmem:[%s1630_s4 + $0x58] sm:$0xff]  ;;  %v287_v43 = vld [vmem:[%s1630_s4 + $0xe8] sm:$0xff]  ;;  %v270_v44 = vld [vmem:[%s1630_s4 + $0x60] sm:$0xff] }
  0x1b   :  { %v271_v45 = vld [vmem:[%s1630_s4 + $0x68] sm:$0xff]  ;;  %v288_v46 = vld [vmem:[%s1630_s4 + $0xf0] sm:$0xff]  ;;  %v289_v47 = vld [vmem:[%s1630_s4 + $0xf8] sm:$0xff] }
  0x1c   :  { %382 = vperm.xlu0 %1171, %v276_v22   ;;  %v272_v48 = vld [vmem:[%s1630_s4 + $0x70] sm:$0xff]  ;;  %v273_v49 = vld [vmem:[%s1630_s4 + $0x78] sm:$0xff]  ;;  %v808_v50 = vld [vmem:[%s1632_s6] sm:$0xff] }
  0x1d   :  { %387 = vperm.xlu1 %1172, %v277_v23   ;;  %v809_v51 = vld [vmem:[%s1632_s6 + $0x8] sm:$0x3]  ;;  %v226_v52 = vld [vmem:[%s1629_s3] sm:$0xff] }
  0x1e   :  { %1071 = vmatprep.mubr.msk.f32.mxu1 %vm450_vm2, %v226_v52  ;;  %v254_v52 = vld [vmem:[%s1629_s3 + $0xe0] sm:$0xff] }
  0x20   :  { %302 = vperm.xlu0 %1171, %v260_v24  }
  0x21   :  { %307 = vperm.xlu1 %1172, %v261_v25   ;;  %v227_v25 = vld [vmem:[%s1629_s3 + $0x8] sm:$0xff] }
  0x24   :  { %392 = vperm.xlu0 %1171, %v278_v26   ;;  %v228_v26 = vld [vmem:[%s1629_s3 + $0x10] sm:$0xff] }
  0x25   :  { %397 = vperm.xlu1 %1172, %v279_v27   ;;  %v229_v27 = vld [vmem:[%s1629_s3 + $0x18] sm:$0xff] }
  0x28   :  { %312 = vperm.xlu0 %1171, %v262_v28   ;;  %v230_v28 = vld [vmem:[%s1629_s3 + $0x20] sm:$0xff] }
  0x29   :  { %317 = vperm.xlu1 %1172, %v263_v29   ;;  %v231_v29 = vld [vmem:[%s1629_s3 + $0x28] sm:$0xff] }
  0x2c   :  { %402 = vperm.xlu0 %1171, %v280_v30   ;;  %v232_v30 = vld [vmem:[%s1629_s3 + $0x30] sm:$0xff] }
  0x2d   :  { %407 = vperm.xlu1 %1172, %v281_v31   ;;  %v233_v31 = vld [vmem:[%s1629_s3 + $0x38] sm:$0xff] }
  0x30   :  { %322 = vperm.xlu0 %1171, %v264_v32   ;;  %v234_v32 = vld [vmem:[%s1629_s3 + $0x40] sm:$0xff] }
  0x31   :  { %327 = vperm.xlu1 %1172, %v265_v33   ;;  %v235_v33 = vld [vmem:[%s1629_s3 + $0x48] sm:$0xff] }
  0x34   :  { %412 = vperm.xlu0 %1171, %v282_v34   ;;  %v236_v34 = vld [vmem:[%s1629_s3 + $0x50] sm:$0xff] }
  0x35   :  { %417 = vperm.xlu1 %1172, %v283_v35   ;;  %v237_v35 = vld [vmem:[%s1629_s3 + $0x58] sm:$0xff] }
  0x38   :  { %332 = vperm.xlu0 %1171, %v266_v36   ;;  %v238_v36 = vld [vmem:[%s1629_s3 + $0x60] sm:$0xff] }
  0x39   :  { %337 = vperm.xlu1 %1172, %v267_v37   ;;  %v239_v37 = vld [vmem:[%s1629_s3 + $0x68] sm:$0xff] }
  0x3c   :  { %422 = vperm.xlu0 %1171, %v284_v38   ;;  %v240_v38 = vld [vmem:[%s1629_s3 + $0x70] sm:$0xff] }
  0x3d   :  { %427 = vperm.xlu1 %1172, %v285_v39   ;;  %v241_v39 = vld [vmem:[%s1629_s3 + $0x78] sm:$0xff] }
  0x40   :  { %342 = vperm.xlu0 %1171, %v268_v40   ;;  %v242_v40 = vld [vmem:[%s1629_s3 + $0x80] sm:$0xff] }
  0x41   :  { %347 = vperm.xlu1 %1172, %v269_v41   ;;  %v243_v41 = vld [vmem:[%s1629_s3 + $0x88] sm:$0xff] }
  0x44   :  { %432 = vperm.xlu0 %1171, %v286_v42   ;;  %v244_v42 = vld [vmem:[%s1629_s3 + $0x90] sm:$0xff] }
  0x45   :  { %437 = vperm.xlu1 %1172, %v287_v43   ;;  %v245_v43 = vld [vmem:[%s1629_s3 + $0x98] sm:$0xff] }
  0x48   :  { %352 = vperm.xlu0 %1171, %v270_v44   ;;  %v246_v44 = vld [vmem:[%s1629_s3 + $0xa0] sm:$0xff] }
  0x49   :  { %357 = vperm.xlu1 %1172, %v271_v45   ;;  %v247_v45 = vld [vmem:[%s1629_s3 + $0xa8] sm:$0xff] }
  0x4c   :  { %442 = vperm.xlu0 %1171, %v288_v46   ;;  %v248_v46 = vld [vmem:[%s1629_s3 + $0xb0] sm:$0xff] }
  0x4d   :  { %447 = vperm.xlu1 %1172, %v289_v47   ;;  %v249_v47 = vld [vmem:[%s1629_s3 + $0xb8] sm:$0xff] }
  0x50   :  { %362 = vperm.xlu0 %1171, %v272_v48   ;;  %v250_v48 = vld [vmem:[%s1629_s3 + $0xc0] sm:$0xff] }
  0x51   :  { %367 = vperm.xlu1 %1172, %v273_v49   ;;  %v251_v49 = vld [vmem:[%s1629_s3 + $0xc8] sm:$0xff] }
  0x54   :  { %812 = vperm.xlu0 %1171, %v808_v50   ;;  %v252_v50 = vld [vmem:[%s1629_s3 + $0xd0] sm:$0xff] }
  0x55   :  { %817 = vperm.xlu1 %1172, %v809_v51   ;;  %v253_v51 = vld [vmem:[%s1629_s3 + $0xd8] sm:$0xff] }
  0x83   :  { %v47_v53 = vpop.permute.xlu0 %46 }
  0x84   :  { %v57_v54 = vpop.permute.xlu1 %56 }
  0x87   :  { %v52_v55 = vpop.permute.xlu0 %51 }
  0x88   :  { %v62_v56 = vpop.permute.xlu1 %61 }
  0x8b   :  { %v67_v5 = vpop.permute.xlu0 %66 }
  0x8c   :  { %v72_v2 = vpop.permute.xlu1 %71 }
  0x8f   :  { %v77_v17 = vpop.permute.xlu0 %76 }
  0x90   :  { %v82_v14 = vpop.permute.xlu1 %81 }
  0xd7   :  { %v1045_v57 = vpop.f32.mrb[0].mxu0 }
  0xd8   :  { %v185_v58 = vadd.f32 %v1045_v57, %v52_v55  ;;  %v179_v59 = vpop.f32.mrb[1].mxu0  ;;  %v257_v55 = vld [vmem:[%s1629_s3 + $0xf8] sm:$0xff]  ;;  %v1532_v57 = vpop.permute.xlu0 %372 }
  0xd9   :  { %v180_v60 = vadd.f32 %v179_v59, %v47_v53  ;;  %v255_v53 = vld [vmem:[%s1629_s3 + $0xe8] sm:$0xff] }
  0xda   :  { %v219_v61 = vmax.f32 %v185_v58, 0.0  ;;  %v805_v58 = vld [vmem:[%s1631_s5 + $0x8] sm:$0xff] }
  0xdb   :  { %v218_v62 = vmax.f32 %v180_v60, 0.0  ;;  %v1048_v63 = vpop.f32.mrb[2].mxu0  ;;  %884 = vmatprep.mubr.f32.mxu0 %v805_v58 }
  0xdc   :  { %v195_v0 = vadd.f32 %v1048_v63, %v62_v56  ;;  %v189_v1 = vpop.f32.mrb[3].mxu0  ;;  %v1530_v56 = vpop.permute.xlu1 %377 }
  0xdd   :  { %v190_v3 = vadd.f32 %v189_v1, %v57_v54  ;;  %v1119_v4 = vpack.c.bf16 %v219_v61, %v218_v62  ;;  %v256_v54 = vld [vmem:[%s1629_s3 + $0xf0] sm:$0xff]  ;;  %v293_v60 = vpop.permute.xlu0 %292 }
  0xde   :  { %v221_v6 = vmax.f32 %v195_v0, 0.0 }
  0xdf   :  { %v220_v7 = vmax.f32 %v190_v3, 0.0  ;;  %v1051_v8 = vpop.f32.mrb[4].mxu0  ;;  %1120 = vmatprep.subr.bf16.mxu1 %v1119_v4 }
  0xe0   :  { %v205_v9 = vadd.f32 %v1051_v8, %v72_v2  ;;  %v199_v10 = vpop.f32.mrb[5].mxu0  ;;  %1122 = vmatpush3.bf16.msra.mxu1 %v1119_v4  ;;  %v298_v59 = vpop.permute.xlu1 %297 }
  0xe1   :  { %v1123_v11 = vpack.c.bf16 %v221_v6, %v220_v7  ;;  %v200_v12 = vadd.f32 %v199_v10, %v67_v5  ;;  %v1539_v62 = vpop.permute.xlu0 %382 }
  0xe2   :  { %v223_v13 = vmax.f32 %v205_v9, 0.0 }
  0xe3   :  { %v222_v15 = vmax.f32 %v200_v12, 0.0  ;;  %v1054_v16 = vpop.f32.mrb[6].mxu0  ;;  %1124 = vmatprep.subr.bf16.mxu1 %v1123_v11 }
  0xe4   :  { %v215_v18 = vadd.f32 %v1054_v16, %v82_v14  ;;  %v209_v19 = vpop.f32.mrb[7].mxu0  ;;  %1126 = vmatpush3.bf16.msra.mxu1 %v1123_v11  ;;  %v1537_v61 = vpop.permute.xlu1 %387 }
  0xe5   :  { %v1127_v20 = vpack.c.bf16 %v223_v13, %v222_v15  ;;  %v210_v21 = vadd.f32 %v209_v19, %v77_v17  ;;  %v303_v0 = vpop.permute.xlu0 %302 }
  0xe6   :  { %v225_v22 = vmax.f32 %v215_v18, 0.0 }
  0xe7   :  { %v224_v23 = vmax.f32 %v210_v21, 0.0  ;;  %1128 = vmatprep.subr.bf16.mxu1 %v1127_v20 }
  0xe8   :  { %1130 = vmatpush3.bf16.msra.mxu1 %v1127_v20  ;;  %v308_v63 = vpop.permute.xlu1 %307 }
  0xe9   :  { %v1131_v24 = vpack.c.bf16 %v225_v22, %v224_v23  ;;  %v1543_v2 = vpop.permute.xlu0 %392 }
  0xeb   :  { %1132 = vmatprep.subr.bf16.mxu1 %v1131_v24 }
  0xec   :  { %1134 = vmatpush3.bf16.msra.mxu1 %v1131_v24  ;;  %v1541_v1 = vpop.permute.xlu1 %397 }
  0xed   :  { %v313_v4 = vpop.permute.xlu0 %312 }
  0xef   :  { %1072 = vmatmul.mubr.msk.f32.vlgmr.msra.gmra.mrb[0].mxu1 %vm450_vm2, %v227_v25 }
  0xf0   :  { %1074 = vmatprep.mubr.msk.f32.mxu1 %vm450_vm2, %v228_v26  ;;  %v318_v3 = vpop.permute.xlu1 %317 }
  0xf1   :  { %v1547_v6 = vpop.permute.xlu0 %402 }
  0xf3   :  { %1075 = vmatmul.mubr.msk.f32.gmra.mrb[2].mxu1 %vm450_vm2, %v229_v27 }
  0xf4   :  { %1077 = vmatprep.mubr.msk.f32.mxu1 %vm450_vm2, %v230_v28  ;;  %v1545_v5 = vpop.permute.xlu1 %407 }
  0xf5   :  { %v323_v8 = vpop.permute.xlu0 %322 }
  0xf7   :  { %1078 = vmatmul.mubr.msk.f32.gmra.mrb[4].mxu1 %vm450_vm2, %v231_v29 }
  0xf8   :  { %1080 = vmatprep.mubr.msk.f32.mxu1 %vm450_vm2, %v232_v30  ;;  %v328_v7 = vpop.permute.xlu1 %327 }
  0xf9   :  { %v1551_v10 = vpop.permute.xlu0 %412 }
  0xfb   :  { %1081 = vmatmul.mubr.msk.f32.gmra.mrb[6].mxu1 %vm450_vm2, %v233_v31 }
  0xfc   :  { %1083 = vmatprep.mubr.msk.f32.mxu1 %vm450_vm2, %v234_v32  ;;  %v1549_v9 = vpop.permute.xlu1 %417 }
  0xfd   :  { %v333_v12 = vpop.permute.xlu0 %332 }
  0xff   :  { %1084 = vmatmul.mubr.msk.f32.gmra.mrb[8].mxu1 %vm450_vm2, %v235_v33 }
 0x100   :  { %1086 = vmatprep.mubr.msk.f32.mxu1 %vm450_vm2, %v236_v34  ;;  %v338_v11 = vpop.permute.xlu1 %337 }
 0x101   :  { %v1555_v14 = vpop.permute.xlu0 %422 }
 0x103   :  { %1087 = vmatmul.mubr.msk.f32.gmra.mrb[10].mxu1 %vm450_vm2, %v237_v35 }
 0x104   :  { %1089 = vmatprep.mubr.msk.f32.mxu1 %vm450_vm2, %v238_v36  ;;  %v1553_v13 = vpop.permute.xlu1 %427 }
 0x105   :  { %v343_v23 = vpop.permute.xlu0 %342 }
 0x107   :  { %1090 = vmatmul.mubr.msk.f32.gmra.mrb[12].mxu1 %vm450_vm2, %v239_v37 }
 0x108   :  { %1092 = vmatprep.mubr.msk.f32.mxu1 %vm450_vm2, %v240_v38  ;;  %v348_v20 = vpop.permute.xlu1 %347 }
 0x109   :  { %v1563_v36 = vpop.permute.xlu0 %432 }
 0x10b   :  { %1093 = vmatmul.mubr.msk.f32.gmra.mrb[14].mxu1 %vm450_vm2, %v241_v39 }
 0x10c   :  { %1095 = vmatprep.mubr.msk.f32.mxu1 %vm450_vm2, %v242_v40  ;;  %v1559_v33 = vpop.permute.xlu1 %437 }
 0x10f   :  { %1096 = vmatmul.mubr.msk.f32.gmra.mrb[16].mxu1 %vm450_vm2, %v243_v41 }
 0x110   :  { %1098 = vmatprep.mubr.msk.f32.mxu1 %vm450_vm2, %v244_v42 }
 0x113   :  { %1099 = vmatmul.mubr.msk.f32.gmra.mrb[18].mxu1 %vm450_vm2, %v245_v43 }
 0x114   :  { %1101 = vmatprep.mubr.msk.f32.mxu1 %vm450_vm2, %v246_v44 }
 0x117   :  { %1102 = vmatmul.mubr.msk.f32.gmra.mrb[20].mxu1 %vm450_vm2, %v247_v45  ;;  %v358_v45 = vpop.permute.xlu1 %357 }
 0x118   :  { %1104 = vmatprep.mubr.msk.f32.mxu1 %vm450_vm2, %v248_v46 }
 0x11b   :  { %1105 = vmatmul.mubr.msk.f32.gmra.mrb[22].mxu1 %vm450_vm2, %v249_v47 }
 0x11c   :  { %1107 = vmatprep.mubr.msk.f32.mxu1 %vm450_vm2, %v250_v48  ;;  %v353_v48 = vpop.permute.xlu0 %352 }
 0x11f   :  { %1108 = vmatmul.mubr.msk.f32.gmra.mrb[24].mxu1 %vm450_vm2, %v251_v49 }
 0x120   :  { %1110 = vmatprep.mubr.msk.f32.mxu1 %vm450_vm2, %v252_v50 }
 0x123   :  { %1111 = vmatmul.mubr.msk.f32.gmra.mrb[26].mxu1 %vm450_vm2, %v253_v51 }
 0x124   :  { %1113 = vmatprep.mubr.msk.f32.mxu1 %vm450_vm2, %v254_v52 }
 0x127   :  { %1114 = vmatmul.mubr.msk.f32.gmra.mrb[28].mxu1 %vm450_vm2, %v255_v53 }
 0x128   :  { %1116 = vmatprep.mubr.msk.f32.mxu1 %vm450_vm2, %v256_v54 }
 0x12b   :  { %1117 = vmatmul.mubr.msk.f32.gmra.mrb[30].mxu1 %vm450_vm2, %v257_v55 }
 0x1c2   :  { %v1073_v15 = vpop.f32.mrb[0].mxu1 }
 0x1c3   :  { %v619_v16 = vadd.f32 %v1073_v15, %v298_v59  ;;  %v613_v17 = vpop.f32.mrb[1].mxu1 }
 0x1c4   :  { %v614_v18 = vadd.f32 %v613_v17, %v293_v60  ;;  %v1569_v60 = vpop.permute.xlu1 %447 }
 0x1c5   :  { %v773_v19 = vmax.f32 %v619_v16, 0.0 }
 0x1c6   :  { %v772_v21 = vmax.f32 %v614_v18, 0.0  ;;  %v1076_v22 = vpop.f32.mrb[2].mxu1 }
 0x1c7   :  { %v629_v24 = vadd.f32 %v1076_v22, %v308_v63  ;;  %v623_v25 = vpop.f32.mrb[3].mxu1 }
 0x1c8   :  { %v1557_v26 = vpack.c.bf16 %v773_v19, %v772_v21  ;;  %v624_v27 = vadd.f32 %v623_v25, %v303_v0  ;;  %v368_v18 = vpop.permute.xlu1 %367 }
 0x1c9   :  { %v775_v28 = vmax.f32 %v629_v24, 0.0 }
 0x1ca   :  { %v774_v29 = vmax.f32 %v624_v27, 0.0  ;;  %v1079_v30 = vpop.f32.mrb[4].mxu1 }
 0x1cb   :  { %v639_v31 = vadd.f32 %v1079_v30, %v318_v3  ;;  %v633_v32 = vpop.f32.mrb[5].mxu1  ;;  %v1573_v3 = vpop.permute.xlu0 %442 }
 0x1cc   :  { %v1561_v34 = vpack.c.bf16 %v775_v28, %v774_v29  ;;  %v634_v35 = vadd.f32 %v633_v32, %v313_v4 }
 0x1cd   :  { %v777_v37 = vmax.f32 %v639_v31, 0.0 }
 0x1ce   :  { %v776_v38 = vmax.f32 %v634_v35, 0.0  ;;  %v1082_v39 = vpop.f32.mrb[6].mxu1 }
 0x1cf   :  { %v649_v40 = vadd.f32 %v1082_v39, %v328_v7  ;;  %v643_v41 = vpop.f32.mrb[7].mxu1  ;;  %v363_v21 = vpop.permute.xlu0 %362 }
 0x1d0   :  { %v1565_v42 = vpack.c.bf16 %v777_v37, %v776_v38  ;;  %v644_v43 = vadd.f32 %v643_v41, %v323_v8 }
 0x1d1   :  { %v779_v44 = vmax.f32 %v649_v40, 0.0 }
 0x1d2   :  { %v778_v46 = vmax.f32 %v644_v43, 0.0  ;;  %v1085_v47 = vpop.f32.mrb[8].mxu1 }
 0x1d3   :  { %v659_v49 = vadd.f32 %v1085_v47, %v338_v11  ;;  %v653_v50 = vpop.f32.mrb[9].mxu1 }
 0x1d4   :  { %v1567_v51 = vpack.c.bf16 %v779_v44, %v778_v46  ;;  %v654_v52 = vadd.f32 %v653_v50, %v333_v12 }
 0x1d5   :  { %v781_v53 = vmax.f32 %v659_v49, 0.0 }
 0x1d6   :  { %v780_v54 = vmax.f32 %v654_v52, 0.0  ;;  %v1088_v55 = vpop.f32.mrb[10].mxu1 }
 0x1d7   :  { %v669_v58 = vadd.f32 %v1088_v55, %v348_v20  ;;  %v663_v59 = vpop.f32.mrb[11].mxu1 }
 0x1d8   :  { %v1571_v63 = vpack.c.bf16 %v781_v53, %v780_v54  ;;  %v664_v0 = vadd.f32 %v663_v59, %v343_v23 }
 0x1d9   :  { %v783_v4 = vmax.f32 %v669_v58, 0.0 }
 0x1da   :  { %v782_v7 = vmax.f32 %v664_v0, 0.0  ;;  %v1091_v8 = vpop.f32.mrb[12].mxu1 }
 0x1db   :  { %v679_v11 = vadd.f32 %v1091_v8, %v358_v45  ;;  %v673_v15 = vpop.f32.mrb[13].mxu1 }
 0x1dc   :  { %v1575_v16 = vpack.c.bf16 %v783_v4, %v782_v7  ;;  %v674_v12 = vadd.f32 %v673_v15, %v353_v48 }
 0x1dd   :  { %v785_v17 = vmax.f32 %v679_v11, 0.0 }
 0x1de   :  { %v784_v19 = vmax.f32 %v674_v12, 0.0  ;;  %v1094_v20 = vpop.f32.mrb[14].mxu1 }
 0x1df   :  { %v689_v22 = vadd.f32 %v1094_v20, %v368_v18  ;;  %v683_v24 = vpop.f32.mrb[15].mxu1 }
 0x1e0   :  { %v1577_v25 = vpack.c.bf16 %v785_v17, %v784_v19  ;;  %v684_v23 = vadd.f32 %v683_v24, %v363_v21 }
 0x1e1   :  { %v787_v27 = vmax.f32 %v689_v22, 0.0 }
 0x1e2   :  { %v786_v28 = vmax.f32 %v684_v23, 0.0  ;;  %v1097_v29 = vpop.f32.mrb[16].mxu1 }
 0x1e3   :  { %v699_v30 = vadd.f32 %v1097_v29, %v1530_v56  ;;  %v693_v31 = vpop.f32.mrb[17].mxu1 }
 0x1e4   :  { %v1580_v32 = vpack.c.bf16 %v787_v27, %v786_v28  ;;  %v694_v35 = vadd.f32 %v693_v31, %v1532_v57  ;;  %v813_v28 = vpop.permute.xlu0 %812 }
 0x1e5   :  { %v789_v37 = vmax.f32 %v699_v30, 0.0 }
 0x1e6   :  { %v788_v38 = vmax.f32 %v694_v35, 0.0  ;;  %v1100_v39 = vpop.f32.mrb[18].mxu1  ;;  %v818_v35 = vpop.permute.xlu1 %817 }
 0x1e7   :  { %v709_v40 = vadd.f32 %v1100_v39, %v1537_v61  ;;  %v703_v41 = vpop.f32.mrb[19].mxu1 }
 0x1e8   :  { %v1135_v43 = vpack.c.bf16 %v789_v37, %v788_v38  ;;  %v704_v44 = vadd.f32 %v703_v41, %v1539_v62 }
 0x1e9   :  { %v791_v45 = vmax.f32 %v709_v40, 0.0 }
 0x1ea   :  { %v790_v46 = vmax.f32 %v704_v44, 0.0  ;;  %v1103_v47 = vpop.f32.mrb[20].mxu1  ;;  %1136 = vmatprep.subr.bf16.mxu0 %v1135_v43 }
 0x1eb   :  { %v719_v56 = vadd.f32 %v1103_v47, %v1541_v1  ;;  %v713_v48 = vpop.f32.mrb[21].mxu1  ;;  %1138 = vmatpush3.bf16.msra.mxu0 %v1557_v26 }
 0x1ec   :  { %v1139_v49 = vpack.c.bf16 %v791_v45, %v790_v46  ;;  %v714_v57 = vadd.f32 %v713_v48, %v1543_v2 }
 0x1ed   :  { %v793_v50 = vmax.f32 %v719_v56, 0.0 }
 0x1ee   :  { %v792_v52 = vmax.f32 %v714_v57, 0.0  ;;  %v1106_v53 = vpop.f32.mrb[22].mxu1  ;;  %1140 = vmatprep.subr.bf16.mxu0 %v1139_v49 }
 0x1ef   :  { %v729_v61 = vadd.f32 %v1106_v53, %v1545_v5  ;;  %v723_v54 = vpop.f32.mrb[23].mxu1  ;;  %1142 = vmatpush3.bf16.msra.mxu0 %v1561_v34 }
 0x1f0   :  { %v1143_v62 = vpack.c.bf16 %v793_v50, %v792_v52  ;;  %v724_v55 = vadd.f32 %v723_v54, %v1547_v6 }
 0x1f1   :  { %v795_v58 = vmax.f32 %v729_v61, 0.0 }
 0x1f2   :  { %v794_v1 = vmax.f32 %v724_v55, 0.0  ;;  %v1109_v59 = vpop.f32.mrb[24].mxu1  ;;  %1144 = vmatprep.subr.bf16.mxu0 %v1143_v62 }
 0x1f3   :  { %v739_v26 = vadd.f32 %v1109_v59, %v1549_v9  ;;  %v733_v0 = vpop.f32.mrb[25].mxu1  ;;  %1146 = vmatpush3.bf16.msra.mxu0 %v1565_v42 }
 0x1f4   :  { %v1147_v2 = vpack.c.bf16 %v795_v58, %v794_v1  ;;  %v734_v4 = vadd.f32 %v733_v0, %v1551_v10 }
 0x1f5   :  { %v797_v7 = vmax.f32 %v739_v26, 0.0 }
 0x1f6   :  { %v796_v5 = vmax.f32 %v734_v4, 0.0  ;;  %v1112_v8 = vpop.f32.mrb[26].mxu1  ;;  %1148 = vmatprep.subr.bf16.mxu0 %v1147_v2 }
 0x1f7   :  { %v749_v34 = vadd.f32 %v1112_v8, %v1553_v13  ;;  %v743_v11 = vpop.f32.mrb[27].mxu1  ;;  %1150 = vmatpush3.bf16.msra.mxu0 %v1567_v51 }
 0x1f8   :  { %v1151_v6 = vpack.c.bf16 %v797_v7, %v796_v5  ;;  %v744_v15 = vadd.f32 %v743_v11, %v1555_v14 }
 0x1f9   :  { %v799_v12 = vmax.f32 %v749_v34, 0.0 }
 0x1fa   :  { %v798_v9 = vmax.f32 %v744_v15, 0.0  ;;  %v1115_v17 = vpop.f32.mrb[28].mxu1  ;;  %1152 = vmatprep.subr.bf16.mxu0 %v1151_v6 }
 0x1fb   :  { %v759_v42 = vadd.f32 %v1115_v17, %v1559_v33  ;;  %v753_v18 = vpop.f32.mrb[29].mxu1  ;;  %1154 = vmatpush3.bf16.msra.mxu0 %v1571_v63 }
 0x1fc   :  { %v1155_v10 = vpack.c.bf16 %v799_v12, %v798_v9  ;;  %v754_v19 = vadd.f32 %v753_v18, %v1563_v36  ;;  %v804_v36 = vld [vmem:[%s1631_s5] sm:$0xff] }
 0x1fd   :  { %v801_v20 = vmax.f32 %v759_v42, 0.0 }
 0x1fe   :  { %v800_v13 = vmax.f32 %v754_v19, 0.0  ;;  %v1118_v21 = vpop.f32.mrb[30].mxu1  ;;  %1156 = vmatprep.subr.bf16.mxu0 %v1155_v10 }
 0x1ff   :  { %v769_v51 = vadd.f32 %v1118_v21, %v1569_v60  ;;  %v763_v22 = vpop.f32.mrb[31].mxu1  ;;  %1158 = vmatpush3.bf16.msra.mxu0 %v1575_v16  ;;  %v807_v60 = vld [vmem:[%s1631_s5 + $0x18] sm:$0x3] }
 0x200   :  { %v1159_v14 = vpack.c.bf16 %v801_v20, %v800_v13  ;;  %v764_v24 = vadd.f32 %v763_v22, %v1573_v3  ;;  %v806_v3 = vld [vmem:[%s1631_s5 + $0x10] sm:$0x3] }
 0x201   :  { %v803_v23 = vmax.f32 %v769_v51, 0.0 }
 0x202   :  { %v802_v33 = vmax.f32 %v764_v24, 0.0  ;;  %1160 = vmatprep.subr.bf16.mxu0 %v1159_v14 }
 0x203   :  { %1162 = vmatpush3.bf16.msra.mxu0 %v1577_v25 }
 0x204   :  { %v1163_v63 = vpack.c.bf16 %v803_v23, %v802_v33 }
 0x206   :  { %1164 = vmatprep.subr.bf16.mxu0 %v1163_v63 }
 0x207   :  { %1166 = vmatpush3.bf16.msra.mxu0 %v1580_v32 }
 0x20a   :  { %885 = vmatmul.mubr.f32.vlgmr.msra.gmra.mrb[8].mxu0 %v804_v36 }
 0x20b   :  { %889 = vmatprep.mubr.f32.mxu0 %v807_v60 }
 0x20e   :  { %890 = vmatmul.mubr.f32.gmra.mrb[10].mxu0 %v806_v3 }
 0x2dd   :  { %v1035_v16 = vpop.f32.mrb[8].mxu0 }
 0x2de   :  { %v1036_v25 = vpop.f32.mrb[9].mxu0 }
 0x2df   :  { %v1037_v27 = vadd.f32 %v1036_v25, %v1035_v16 }
 0x2e1   :  { %v887_v29 = vadd.f32 %v1037_v27, %v813_v28  ;;  %v1038_v30 = vpop.f32.mrb[10].mxu0 }
 0x2e2   :  { %v1039_v31 = vpop.f32.mrb[11].mxu0 }
 0x2e3   :  { %895 = vst [vmem:[#allocation2] sm:$0xff] %v887_v29  ;;  %v1040_v32 = vadd.f32 %v1039_v31, %v1038_v30 }
 0x2e5   :  { %v892_v37 = vadd.f32 %v1040_v32, %v818_v35 }
 0x2e7   :  { %896 = vst [vmem:[#allocation2 + $0x8] sm:$0x3] %v892_v37 }
 0x2e8   :  { %1184 = shalt.err (!%p1181_p4)
}
 0x2e9   :  { %s1185_s15 = scalar_lea.hbm %s1633_s7, 256 }
 0x2ea   :  { %p1186_p5 = scmp.ne.s32.totalorder %s1633_s7, %s1185_s15  ;;  %p1189_p6 = scmp.lt.u32.totalorder %s1185_s15, %s1633_s7 }
 0x2ec   :  { %p1191_p7 = pnand %p1189_p6, %p1186_p5 }
 0x2ee   :  { %1194 = shalt.err (!%p1191_p7)
}
 0x2ef   :  { %s1199_s20 = smov 128   ;;  %s1200_s21 = smov 8  }
 0x2f0   :  { %908 = dma.vmem_to_hbm [thread:$0]  %s903_s13, 256, %s1633_s7, [#allocation3], %s1199_s20, %s1199_s20, %s1200_s21  }
 0x2f1   :  { %1195 = dma.done.wait [#allocation3], 256  }
 0x2f2   :  { %1196 = vsyncadd [#allocation3], 4294967040 }
 0x2f3   :  { %912 = vsyncpa [#allocation3], 1 }

</bundles_post_ra>
